<compile_context>
chip_gen: v6e
topology: v6e:2x2x1
jax: 0.10.0
libtpu: 0.0.40
codegen_flags: <defaults>
</compile_context>

<pallas_src>
import functools
import math

import jax
import jax.numpy as jnp
from jax.experimental import pallas as pl
from jax.experimental.pallas import tpu as pltpu


_DEFAULT_TM = 256          # preferred row tile (multiple of 8), clamped to the problem
_LANE = 128                # TPU lane width: d_ff padded to a multiple of this
_NEG_BIG = -1e30           # finite "-inf" (keeps the online softmax NaN-free)


def _round_up(x, m):
    return ((x + m - 1) // m) * m


def _row_tile(n_rows, tm):
    tile = max(8, min(int(tm), _round_up(n_rows, 8)))
    # v7x megacore: make the row grid have >=2 steps whenever possible so the "parallel"
    # axis can shard across both TensorCores (no-op on single-TC v5e/v6e).
    if tile >= n_rows and n_rows > 8:
        tile = max(8, _round_up((n_rows + 1) // 2, 8))
    return tile


def _seq_tile(s, pref):
    pref = max(8, (int(pref) // 8) * 8)
    if s <= pref:
        return int(s)
    t = pref
    while t >= 8:
        if s % t == 0:
            return t
        t -= 8
    return pref  # partial blocks; guarded in-kernel


def _ff_tile(d_ff_p, pref):
    pref = max(_LANE, (int(pref) // _LANE) * _LANE)
    t = min(int(d_ff_p), pref)
    while d_ff_p % t != 0:
        t -= _LANE
    return t


# --------------------------------------------------------------------------------------
# Generation-aware scoped-VMEM limit (v5e/v6e: 128 MiB physical, v7x: 64 MiB per TC).
# --------------------------------------------------------------------------------------
_VMEM_LIMIT_CACHE = None


def _vmem_limit():
    global _VMEM_LIMIT_CACHE
    if _VMEM_LIMIT_CACHE is None:
        try:
            cap = int(pltpu.get_tpu_info().vmem_capacity_bytes)
            _VMEM_LIMIT_CACHE = int(min(max(cap * 3 // 4, 32 << 20), 100 << 20))
        except Exception:
            _VMEM_LIMIT_CACHE = 64 << 20
    return _VMEM_LIMIT_CACHE


def _compiler_params(semantics):
    return pltpu.CompilerParams(dimension_semantics=semantics,
                                vmem_limit_bytes=_vmem_limit())


# --------------------------------------------------------------------------------------
# Buffered(1) support probe: single-buffer resident weights (their block index never
# changes), which halves weight VMEM residency.
# --------------------------------------------------------------------------------------
_BUFFERED_ONE_OK = None


def _buffered_one_ok():
    global _BUFFERED_ONE_OK
    if _BUFFERED_ONE_OK is None:
        try:
            def _probe_kernel(x_ref, w_ref, o_ref):
                o_ref[...] = x_ref[...] + w_ref[...]

            x = jnp.zeros((16, 128), jnp.float32)
            w = jnp.zeros((8, 128), jnp.float32)
            out = pl.pallas_call(
                _probe_kernel,
                out_shape=jax.ShapeDtypeStruct((16, 128), jnp.float32),
                grid=(2,),
                in_specs=[
                    pl.BlockSpec((8, 128), lambda i: (i, 0)),
                    pl.BlockSpec((8, 128), lambda i: (0, 0),
                                 pipeline_mode=pl.Buffered(1)),
                ],
                out_specs=pl.BlockSpec((8, 128), lambda i: (i, 0)),
            )(x, w)
            jax.block_until_ready(out)
            _BUFFERED_ONE_OK = True
        except Exception:
            _BUFFERED_ONE_OK = False
    return _BUFFERED_ONE_OK


def _row_spec(tile, feat):
    return pl.BlockSpec((tile, feat), lambda i: (i, 0))


def _const_spec(arr, buffered=True):
    ndim = arr.ndim
    index_map = lambda *_: (0,) * ndim
    if buffered and _buffered_one_ok():
        return pl.BlockSpec(arr.shape, index_map, pipeline_mode=pl.Buffered(1))
    return pl.BlockSpec(arr.shape, index_map)


# --------------------------------------------------------------------------------------
# Kernel bodies
# --------------------------------------------------------------------------------------
def _layer_norm(x, gamma, beta, eps):
    mean = jnp.mean(x, axis=-1, keepdims=True)
    xc = x - mean
    var = jnp.mean(xc * xc, axis=-1, keepdims=True)
    return xc * jax.lax.rsqrt(var + eps) * gamma + beta


def _gelu(h, approx):
    if approx:  # PyTorch approximate='tanh' numerics (EUP-friendly); off by default
        return 0.5 * h * (1.0 + jnp.tanh(math.sqrt(2.0 / math.pi)
                                         * (h + 0.044715 * h * h * h)))
    return 0.5 * h * (1.0 + jax.lax.erf(h * (1.0 / math.sqrt(2.0))))


def _ln_linear_kernel(x_ref, g_ref, b_ref, w_ref, bias_ref, o_ref, *, eps, matmul_dtype):
    x = x_ref[...].astype(jnp.float32)
    xn = _layer_norm(x, g_ref[...], b_ref[...], eps)
    y = jnp.dot(xn.astype(matmul_dtype), w_ref[...],
                preferred_element_type=jnp.float32) + bias_ref[...]
    o_ref[...] = y.astype(o_ref.dtype)


def _linear_kernel(x_ref, w_ref, bias_ref, o_ref, *, matmul_dtype):
    y = jnp.dot(x_ref[...].astype(matmul_dtype), w_ref[...],
                preferred_element_type=jnp.float32) + bias_ref[...]
    o_ref[...] = y.astype(o_ref.dtype)


def _linear_residual_kernel(x_ref, w_ref, bias_ref, res_ref, o_ref, *, matmul_dtype):
    y = jnp.dot(x_ref[...].astype(matmul_dtype), w_ref[...],
                preferred_element_type=jnp.float32) + bias_ref[...]
    # dropout on the sublayer output is identity at inference time
    o_ref[...] = (res_ref[...].astype(jnp.float32) + y).astype(o_ref.dtype)


def _ln_ffn_kernel(x_ref, g_ref, b_ref, w1_ref, b1_ref, w2_ref, b2_ref, o_ref,
                   xn_ref, acc_ref, *, eps, approx_gelu, matmul_dtype):
    fi = pl.program_id(1)
    nf = pl.num_programs(1)

    @pl.when(fi == 0)
    def _():
        x = x_ref[...].astype(jnp.float32)
        xn = _layer_norm(x, g_ref[...], b_ref[...], eps)
        xn_ref[...] = xn.astype(matmul_dtype)
        acc_ref[...] = x + b2_ref[...]          # residual + final bias seeded once

    h = jnp.dot(xn_ref[...], w1_ref[...],
                preferred_element_type=jnp.float32) + b1_ref[...]
    h = _gelu(h, approx_gelu)                   # f32 elementwise (v5e-safe)
    # TODO(synk): training-mode dropout (pltpu.prng_random_bits mask) not wired in.
    acc_ref[...] += jnp.dot(h.astype(matmul_dtype), w2_ref[...],
                            preferred_element_type=jnp.float32)

    @pl.when(fi == nf - 1)
    def _():
        o_ref[...] = acc_ref[...].astype(o_ref.dtype)


def _layernorm_kernel(x_ref, g_ref, b_ref, o_ref, *, eps):
    x = x_ref[...].astype(jnp.float32)
    o_ref[...] = _layer_norm(x, g_ref[...], b_ref[...], eps).astype(o_ref.dtype)


def _flash_attn_kernel(q_ref, k_ref, v_ref, o_ref, m_ref, l_ref, acc_ref, *,
                       causal, window, global_tokens, scale, tq, tk, sk, matmul_dtype):
    qi = pl.program_id(1)
    ki = pl.program_id(2)
    nk = pl.num_programs(2)

    @pl.when(ki == 0)
    def _():
        m_ref[...] = jnp.full(m_ref.shape, _NEG_BIG, jnp.float32)
        l_ref[...] = jnp.zeros(l_ref.shape, jnp.float32)
        acc_ref[...] = jnp.zeros(acc_ref.shape, jnp.float32)

    q_start = qi * tq
    k_start = ki * tk
    # Block-level liveness: skip KV blocks entirely outside the local window (plus the
    # global-token stripe), and past the causal frontier.  (DMA of skipped blocks still
    # happens; a restricted kv-axis index_map is a follow-up.)
    live = jnp.logical_and(k_start <= q_start + (tq - 1) + window,
                           k_start + (tk - 1) >= q_start - window)
    if global_tokens > 0:
        live = jnp.logical_or(live, q_start < global_tokens)
        live = jnp.logical_or(live, k_start < global_tokens)
    if causal:
        live = jnp.logical_and(live, k_start <= q_start + (tq - 1))

    @pl.when(live)
    def _():
        # 1/sqrt(dk) folded into q (f32) before the MXU cast.
        q = (q_ref[0].astype(jnp.float32) * scale).astype(matmul_dtype)
        k = k_ref[0].astype(matmul_dtype)
        s = jax.lax.dot_general(q, k, (((1,), (1,)), ((), ())),
                                preferred_element_type=jnp.float32)   # [tq, tk]
        i = q_start + jax.lax.broadcasted_iota(jnp.int32, (tq, tk), 0)
        j = k_start + jax.lax.broadcasted_iota(jnp.int32, (tq, tk), 1)
        allowed = jnp.abs(i - j) <= window
        if global_tokens > 0:
            allowed = jnp.logical_or(allowed, jnp.logical_or(i < global_tokens,
                                                             j < global_tokens))
        if causal:
            allowed = jnp.logical_and(allowed, j <= i)
        allowed = jnp.logical_and(allowed, j < sk)    # guard partial KV blocks
        s = jnp.where(allowed, s, _NEG_BIG)

        if sk % tk != 0:  # zero garbage V rows of a partial last block (NaN-safe)
            valid = (k_start + jax.lax.broadcasted_iota(jnp.int32, (tk, 1), 0)) < sk
            v = jnp.where(valid, v_ref[0].astype(jnp.float32), 0.0).astype(matmul_dtype)
        else:
            v = v_ref[0].astype(matmul_dtype)

        m_prev = m_ref[...]
        m_new = jnp.maximum(m_prev, jnp.max(s, axis=-1, keepdims=True))
        alpha = jnp.exp(m_prev - m_new)
        e = jnp.exp(s - m_new)                        # unnormalized probabilities
        l_ref[...] = alpha * l_ref[...] + jnp.sum(e, axis=-1, keepdims=True)
        acc_ref[...] = alpha * acc_ref[...] + jnp.dot(
            e.astype(matmul_dtype), v, preferred_element_type=jnp.float32)
        m_ref[...] = m_new

    @pl.when(ki == nk - 1)
    def _():
        # attention-probability dropout is identity at inference time
        o_ref[0] = (acc_ref[...] *
                    pl.reciprocal(l_ref[...], approx=True)).astype(o_ref.dtype)


# --------------------------------------------------------------------------------------
# Pallas-call wrappers
# --------------------------------------------------------------------------------------
def _ln_linear(x2, g2, b2, w, bias2, *, eps, tm, matmul_dtype, out_dtype=None):
    n, d_in = x2.shape
    d_out = w.shape[1]
    if out_dtype is None:
        out_dtype = x2.dtype
    tile = _row_tile(n, tm)
    return pl.pallas_call(
        functools.partial(_ln_linear_kernel, eps=eps, matmul_dtype=matmul_dtype),
        out_shape=jax.ShapeDtypeStruct((n, d_out), out_dtype),
        grid=(pl.cdiv(n, tile),),
        in_specs=[_row_spec(tile, d_in), _const_spec(g2), _const_spec(b2),
                  _const_spec(w), _const_spec(bias2)],
        out_specs=_row_spec(tile, d_out),
        compiler_params=_compiler_params(("parallel",)),
    )(x2, g2, b2, w, bias2)


def _linear(x2, w, bias2, *, tm, matmul_dtype, out_dtype=None):
    n, d_in = x2.shape
    d_out = w.shape[1]
    if out_dtype is None:
        out_dtype = x2.dtype
    tile = _row_tile(n, tm)
    return pl.pallas_call(
        functools.partial(_linear_kernel, matmul_dtype=matmul_dtype),
        out_shape=jax.ShapeDtypeStruct((n, d_out), out_dtype),
        grid=(pl.cdiv(n, tile),),
        in_specs=[_row_spec(tile, d_in), _const_spec(w), _const_spec(bias2)],
        out_specs=_row_spec(tile, d_out),
        compiler_params=_compiler_params(("parallel",)),
    )(x2, w, bias2)


def _linear_residual(x2, w, bias2, res, *, tm, matmul_dtype):
    n, d_in = x2.shape
    d_out = w.shape[1]
    tile = _row_tile(n, tm)
    return pl.pallas_call(
        functools.partial(_linear_residual_kernel, matmul_dtype=matmul_dtype),
        out_shape=jax.ShapeDtypeStruct((n, d_out), res.dtype),
        grid=(pl.cdiv(n, tile),),
        in_specs=[_row_spec(tile, d_in), _const_spec(w), _const_spec(bias2),
                  _row_spec(tile, d_out)],
        out_specs=_row_spec(tile, d_out),
        compiler_params=_compiler_params(("parallel",)),
    )(x2, w, bias2, res)


def _ln_ffn_residual(x2, ln_g, ln_b, w1, b1, w2, b2, *, eps, tm, tff_pref,
                     approx_gelu, matmul_dtype):
    n, d_model = x2.shape
    d_ff_p = w1.shape[1]                       # already padded to a lane multiple
    tile = _row_tile(n, tm)
    tff = _ff_tile(d_ff_p, tff_pref)
    nf = d_ff_p // tff
    return pl.pallas_call(
        functools.partial(_ln_ffn_kernel, eps=eps, approx_gelu=approx_gelu,
                          matmul_dtype=matmul_dtype),
        out_shape=jax.ShapeDtypeStruct((n, d_model), x2.dtype),
        grid=(pl.cdiv(n, tile), nf),
        in_specs=[
            pl.BlockSpec((tile, d_model), lambda i, f: (i, 0)),   # x (resident over f)
            _const_spec(ln_g, buffered=False), _const_spec(ln_b, buffered=False),
            pl.BlockSpec((d_model, tff), lambda i, f: (0, f)),    # W1 slab
            pl.BlockSpec((1, tff), lambda i, f: (0, f)),          # b1 slab
            pl.BlockSpec((tff, d_model), lambda i, f: (f, 0)),    # W2 slab
            _const_spec(b2, buffered=False),
        ],
        out_specs=pl.BlockSpec((tile, d_model), lambda i, f: (i, 0)),
        scratch_shapes=[pltpu.VMEM((tile, d_model), matmul_dtype),   # cached LN(x)
                        pltpu.VMEM((tile, d_model), jnp.float32)],   # f32 accumulator
        compiler_params=_compiler_params(("parallel", "arbitrary")),
    )(x2, ln_g, ln_b, w1, b1, w2, b2)


def _layernorm_rows(x2, g2, b2, *, eps, tm):
    n, d = x2.shape
    tile = _row_tile(n, tm)
    return pl.pallas_call(
        functools.partial(_layernorm_kernel, eps=eps),
        out_shape=jax.ShapeDtypeStruct((n, d), x2.dtype),
        grid=(pl.cdiv(n, tile),),
        in_specs=[_row_spec(tile, d), _const_spec(g2), _const_spec(b2)],
        out_specs=_row_spec(tile, d),
        compiler_params=_compiler_params(("parallel",)),
    )(x2, g2, b2)


def _flash_attention(q, k, v, *, causal, window, global_tokens, matmul_dtype,
                     tq=128, tk=128):
    bh, sq, dk = q.shape
    sk = k.shape[1]
    tq_ = _seq_tile(sq, tq)
    tk_ = _seq_tile(sk, tk)
    nq, nk = pl.cdiv(sq, tq_), pl.cdiv(sk, tk_)
    kern = functools.partial(_flash_attn_kernel, causal=causal, window=int(window),
                             global_tokens=int(global_tokens),
                             scale=1.0 / math.sqrt(dk), tq=tq_, tk=tk_, sk=int(sk),
                             matmul_dtype=matmul_dtype)
    return pl.pallas_call(
        kern,
        out_shape=jax.ShapeDtypeStruct((bh, sq, dk), q.dtype),
        grid=(bh, nq, nk),
        in_specs=[pl.BlockSpec((1, tq_, dk), lambda b, qi, ki: (b, qi, 0)),
                  pl.BlockSpec((1, tk_, dk), lambda b, qi, ki: (b, ki, 0)),
                  pl.BlockSpec((1, tk_, dk), lambda b, qi, ki: (b, ki, 0))],
        out_specs=pl.BlockSpec((1, tq_, dk), lambda b, qi, ki: (b, qi, 0)),
        scratch_shapes=[pltpu.VMEM((tq_, 1), jnp.float32),    # running max m
                        pltpu.VMEM((tq_, 1), jnp.float32),    # running sum l
                        pltpu.VMEM((tq_, dk), jnp.float32)],  # output accumulator
        compiler_params=_compiler_params(("parallel", "parallel", "arbitrary")),
    )(q, k, v)


# --------------------------------------------------------------------------------------
# One-time parameter preparation (hoists per-layer weight fusion out of the forward)
# --------------------------------------------------------------------------------------
def prepare_decoder_params(params, *, matmul_dtype=jnp.bfloat16):
    if isinstance(params, dict) and params.get("prepared"):
        return params
    md = jnp.dtype(matmul_dtype)

    def vec(v):
        return jnp.asarray(v, jnp.float32).reshape(1, -1)

    layers = []
    for L in params["layers"]:
        d_ff = L["w1"].shape[1]
        d_ff_p = _round_up(d_ff, _LANE)
        pad = d_ff_p - d_ff
        w1, b1, w2 = L["w1"], L["b1"], L["w2"]
        if pad:
            # exact: gelu(0) = 0 and zero rows of W2 contribute nothing
            w1 = jnp.pad(w1, ((0, 0), (0, pad)))
            b1 = jnp.pad(b1, (0, pad))
            w2 = jnp.pad(w2, ((0, pad), (0, 0)))
        layers.append(dict(
            ln1_g=vec(L["ln1_g"]), ln1_b=vec(L["ln1_b"]),
            wqkv=jnp.concatenate([L["wq_self"], L["wk_self"], L["wv_self"]],
                                 axis=1).astype(md),
            bqkv=vec(jnp.concatenate([L["bq_self"], L["bk_self"], L["bv_self"]])),
            wo_self=L["wo_self"].astype(md), bo_self=vec(L["bo_self"]),
            ln2_g=vec(L["ln2_g"]), ln2_b=vec(L["ln2_b"]),
            wq_cross=L["wq_cross"].astype(md), bq_cross=vec(L["bq_cross"]),
            wkv_cross=jnp.concatenate([L["wk_cross"], L["wv_cross"]],
                                      axis=1).astype(md),
            bkv_cross=vec(jnp.concatenate([L["bk_cross"], L["bv_cross"]])),
            wo_cross=L["wo_cross"].astype(md), bo_cross=vec(L["bo_cross"]),
            ln3_g=vec(L["ln3_g"]), ln3_b=vec(L["ln3_b"]),
            w1=w1.astype(md), b1=vec(b1), w2=w2.astype(md), b2=vec(L["b2"]),
        ))
    return dict(prepared=True, matmul_dtype=md, layers=layers,
                final_g=vec(params["final_g"]), final_b=vec(params["final_b"]))


# --------------------------------------------------------------------------------------
# Decoder forward (eval mode, no KV cache)
# --------------------------------------------------------------------------------------
def decoder_forward(x, encoder_output, params, *, num_heads, window_size, global_tokens,
                    eps=1e-5, tm=_DEFAULT_TM, attn_tile=128, tff=512,
                    approx_gelu=False, matmul_dtype=jnp.bfloat16):
    # The PyTorch module's K/V .view() requires encoder seq/batch to match the decoder's.
    assert encoder_output.shape == x.shape
    if not (isinstance(params, dict) and params.get("prepared")):
        params = prepare_decoder_params(params, matmul_dtype=matmul_dtype)
    md = params["matmul_dtype"]

    B, S, D = x.shape
    H, dk = num_heads, D // num_heads
    N = B * S
    x2 = x.reshape(N, D)
    enc2 = encoder_output.reshape(N, D)
    # TODO(synk): use_cache / past_key_values incremental-decoding path not implemented.
    # TODO(synk): isfinite/nan_to_num runtime guards omitted (no-ops for finite inputs).
    # TODO(synk): head split/merge stays as XLA transposes; merged-layout BlockSpec head
    #             indexing needs dk (or a head-group) to be a 128-lane multiple.

    def to_heads(t2, groups):
        # (N, groups*D) -> `groups` arrays of shape (B*H, S, dk); one fused transpose.
        t = t2.reshape(B, S, groups, H, dk).transpose(2, 0, 3, 1, 4)
        return tuple(t[g].reshape(B * H, S, dk) for g in range(groups))

    def from_heads(t):
        return t.reshape(B, H, S, dk).transpose(0, 2, 1, 3).reshape(N, D)

    for L in params["layers"]:
        # ---- self-attention sublayer: x = x + Wo·Attn(LN(x)) (causal + local window) ----
        qkv = _ln_linear(x2, L["ln1_g"], L["ln1_b"], L["wqkv"], L["bqkv"],
                         eps=eps, tm=tm, matmul_dtype=md, out_dtype=md)
        q, k, v = to_heads(qkv, 3)
        o = _flash_attention(q, k, v, causal=True, window=window_size,
                             global_tokens=global_tokens, matmul_dtype=md,
                             tq=attn_tile, tk=attn_tile)
        x2 = _linear_residual(from_heads(o), L["wo_self"], L["bo_self"], x2,
                              tm=tm, matmul_dtype=md)

        # ---- cross-attention sublayer: x = x + Wo·Attn(LN(x), enc, enc) (local window) ----
        qc = _ln_linear(x2, L["ln2_g"], L["ln2_b"], L["wq_cross"], L["bq_cross"],
                        eps=eps, tm=tm, matmul_dtype=md, out_dtype=md)
        kv = _linear(enc2, L["wkv_cross"], L["bkv_cross"],   # encoder is NOT layer-normed
                     tm=tm, matmul_dtype=md, out_dtype=md)
        (qh,) = to_heads(qc, 1)
        kc, vc = to_heads(kv, 2)
        oc = _flash_attention(qh, kc, vc, causal=False, window=window_size,
                              global_tokens=global_tokens, matmul_dtype=md,
                              tq=attn_tile, tk=attn_tile)
        x2 = _linear_residual(from_heads(oc), L["wo_cross"], L["bo_cross"], x2,
                              tm=tm, matmul_dtype=md)

        # ---- feed-forward sublayer (fused LN + FFN + residual, d_ff tiled) ----
        x2 = _ln_ffn_residual(x2, L["ln3_g"], L["ln3_b"], L["w1"], L["b1"],
                              L["w2"], L["b2"], eps=eps, tm=tm, tff_pref=tff,
                              approx_gelu=approx_gelu, matmul_dtype=md)

    x2 = _layernorm_rows(x2, params["final_g"], params["final_b"], eps=eps, tm=tm)
    return x2.reshape(B, S, D)


# --------------------------------------------------------------------------------------
# Pure-JAX reference (mirrors the PyTorch module in eval mode)
# --------------------------------------------------------------------------------------
def reference_decoder(x, enc, params, *, num_heads, window, global_tokens, eps=1e-5):
    B, S, D = x.shape
    H, dk = num_heads, D // num_heads
    scale = 1.0 / math.sqrt(dk)

    def ln(t, g, b):
        m = jnp.mean(t, axis=-1, keepdims=True)
        v = jnp.mean((t - m) ** 2, axis=-1, keepdims=True)
        return (t - m) * jax.lax.rsqrt(v + eps) * g + b

    def split_heads(t):
        return t.reshape(B, S, H, dk).transpose(0, 2, 1, 3)

    def merge_heads(t):
        return t.transpose(0, 2, 1, 3).reshape(B, S, D)

    def attn(q, k, v, causal):
        s = jnp.einsum("bhqd,bhkd->bhqk", q, k) * scale
        sq, sk = s.shape[-2], s.shape[-1]
        i = jnp.arange(sq)[:, None]
        j = jnp.arange(sk)[None, :]
        allowed = jnp.abs(i - j) <= window
        if global_tokens > 0:
            allowed = allowed | (i < global_tokens) | (j < global_tokens)
        if causal:
            allowed = allowed & (j <= i)
        s = jnp.where(allowed[None, None, :, :], s, -jnp.inf)
        p = jax.nn.softmax(s, axis=-1)
        return jnp.einsum("bhqk,bhkd->bhqd", p, v)

    def gelu(t):
        return 0.5 * t * (1.0 + jax.lax.erf(t / math.sqrt(2.0)))

    h = x
    for L in params["layers"]:
        n = ln(h, L["ln1_g"], L["ln1_b"])
        q = split_heads(n @ L["wq_self"] + L["bq_self"])
        k = split_heads(n @ L["wk_self"] + L["bk_self"])
        v = split_heads(n @ L["wv_self"] + L["bv_self"])
        o = merge_heads(attn(q, k, v, causal=True))
        h = h + (o @ L["wo_self"] + L["bo_self"])

        n = ln(h, L["ln2_g"], L["ln2_b"])
        q = split_heads(n @ L["wq_cross"] + L["bq_cross"])
        k = split_heads(enc @ L["wk_cross"] + L["bk_cross"])
        v = split_heads(enc @ L["wv_cross"] + L["bv_cross"])
        o = merge_heads(attn(q, k, v, causal=False))
        h = h + (o @ L["wo_cross"] + L["bo_cross"])

        n = ln(h, L["ln3_g"], L["ln3_b"])
        ff = gelu(n @ L["w1"] + L["b1"]) @ L["w2"] + L["b2"]
        h = h + ff
    return ln(h, params["final_g"], params["final_b"])


# --------------------------------------------------------------------------------------
# Demo / correctness check
# --------------------------------------------------------------------------------------
if __name__ == "__main__":
    B, S = 2, 16
    d_model, d_ff, num_heads, num_layers = 32, 256, 4, 2
    window_size, global_tokens = 5, 2

    keys = iter(jax.random.split(jax.random.PRNGKey(0), 256))

    def nrm(shape, scale=1.0):
        return scale * jax.random.normal(next(keys), shape, dtype=jnp.float32)

    attn_sc = 1.0 / math.sqrt(d_model)
    layers = []
    for _ in range(num_layers):
        layers.append(dict(
            ln1_g=1.0 + nrm((d_model,), 0.05), ln1_b=nrm((d_model,), 0.05),
            wq_self=nrm((d_model, d_model), attn_sc), bq_self=nrm((d_model,), 0.02),
            wk_self=nrm((d_model, d_model), attn_sc), bk_self=nrm((d_model,), 0.02),
            wv_self=nrm((d_model, d_model), attn_sc), bv_self=nrm((d_model,), 0.02),
            wo_self=nrm((d_model, d_model), attn_sc), bo_self=nrm((d_model,), 0.02),
            ln2_g=1.0 + nrm((d_model,), 0.05), ln2_b=nrm((d_model,), 0.05),
            wq_cross=nrm((d_model, d_model), attn_sc), bq_cross=nrm((d_model,), 0.02),
            wk_cross=nrm((d_model, d_model), attn_sc), bk_cross=nrm((d_model,), 0.02),
            wv_cross=nrm((d_model, d_model), attn_sc), bv_cross=nrm((d_model,), 0.02),
            wo_cross=nrm((d_model, d_model), attn_sc), bo_cross=nrm((d_model,), 0.02),
            ln3_g=1.0 + nrm((d_model,), 0.05), ln3_b=nrm((d_model,), 0.05),
            w1=nrm((d_model, d_ff), 1.0 / math.sqrt(d_model)), b1=nrm((d_ff,), 0.02),
            w2=nrm((d_ff, d_model), 1.0 / math.sqrt(d_ff)), b2=nrm((d_model,), 0.02),
        ))
    params = dict(layers=layers,
                  final_g=1.0 + nrm((d_model,), 0.05),
                  final_b=nrm((d_model,), 0.05))

    x = jax.random.normal(next(keys), (B, S, d_model), dtype=jnp.float32)
    enc = jax.random.normal(next(keys), (B, S, d_model), dtype=jnp.float32)

    y_ref = reference_decoder(x, enc, params, num_heads=num_heads, window=window_size,
                              global_tokens=global_tokens)
    y_ref = jax.block_until_ready(y_ref)

    # Perf-default path: bf16 MXU operands, large tiles (single KV block at this S).
    p_bf16 = prepare_decoder_params(params, matmul_dtype=jnp.bfloat16)
    y = decoder_forward(x, enc, p_bf16, num_heads=num_heads, window_size=window_size,
                        global_tokens=global_tokens)
    y = jax.block_until_ready(y)
    assert y.shape == (B, S, d_model)
    err_bf16 = float(jnp.max(jnp.abs(y - y_ref)))
    assert err_bf16 < 1e-1, f"bf16 kernel/reference mismatch: max abs err = {err_bf16}"

    # f32 path with small tiles: exercises multi-block online softmax, window/global/
    # causal block skipping, d_ff accumulation across grid steps, and >=2-step row grids.
    p_f32 = prepare_decoder_params(params, matmul_dtype=jnp.float32)
    y32 = decoder_forward(x, enc, p_f32, num_heads=num_heads, window_size=window_size,
                          global_tokens=global_tokens, tm=16, attn_tile=8, tff=128)
    y32 = jax.block_until_ready(y32)
    err_f32 = float(jnp.max(jnp.abs(y32 - y_ref)))
    assert err_f32 < 2e-2, f"f32 kernel/reference mismatch: max abs err = {err_f32}"

    print("KERNEL_OK")
</pallas_src>

<mosaic_0001>
module attributes {stable_mosaic.version = 11 : i64} {
  func.func @_probe_kernel(%arg0: i32, %arg1: memref<8x128xf32, #tpu.memory_space<vmem>>, %arg2: memref<8x128xf32, #tpu.memory_space<vmem>>, %arg3: memref<8x128xf32, #tpu.memory_space<vmem>>) attributes {dimension_semantics = [#tpu.dimension_semantics<arbitrary>], iteration_bounds = array<i64: 2>, scalar_prefetch = 0 : i64, scratch_operands = 0 : i64, tpu.core_type = #tpu.core_type<tc>, window_params = [{transform_indices = @transform_0, window_bounds = array<i64: 8, 128>}, {pipeline_mode = #tpu.pipeline_mode<synchronous>, transform_indices = @transform_1, window_bounds = array<i64: 8, 128>}, {transform_indices = @transform_2, window_bounds = array<i64: 8, 128>}]} {
    %c0 = arith.constant 0 : index
    %c0_0 = arith.constant 0 : index
    %0 = vector.load %arg1[%c0, %c0_0] : memref<8x128xf32, #tpu.memory_space<vmem>>, vector<8x128xf32>
    %c0_1 = arith.constant 0 : index
    %c0_2 = arith.constant 0 : index
    %1 = vector.load %arg2[%c0_1, %c0_2] : memref<8x128xf32, #tpu.memory_space<vmem>>, vector<8x128xf32>
    %2 = arith.addf %0, %1 : vector<8x128xf32>
    %c0_3 = arith.constant 0 : index
    %c0_4 = arith.constant 0 : index
    %3 = vector.load %arg3[%c0_3, %c0_4] : memref<8x128xf32, #tpu.memory_space<vmem>>, vector<8x128xf32>
    tpu.vector_store %arg3[%c0_3, %c0_4], %2 {strides = array<i32>} : memref<8x128xf32, #tpu.memory_space<vmem>>, vector<8x128xf32>,
    return
  }
  func.func @transform_0(%arg0: i32) -> (i32, i32) {
    %c0_i32 = arith.constant 0 : i32
    %c0_i32_0 = arith.constant 0 : i32
    return %arg0, %c0_i32 : i32, i32
  }
  func.func @transform_1(%arg0: i32) -> (i32, i32) {
    %c0_i32 = arith.constant 0 : i32
    %c0_i32_0 = arith.constant 0 : i32
    %c0_i32_1 = arith.constant 0 : i32
    return %c0_i32, %c0_i32_0 : i32, i32
  }
  func.func @transform_2(%arg0: i32) -> (i32, i32) {
    %c0_i32 = arith.constant 0 : i32
    %c0_i32_0 = arith.constant 0 : i32
    return %arg0, %c0_i32 : i32, i32
  }
}

module attributes {stable_mosaic.version = 11 : i64} {
  func.func @_ln_linear_kernel(%arg0: i32, %arg1: memref<16x32xf32, #tpu.memory_space<vmem>>, %arg2: memref<1x32xf32, #tpu.memory_space<vmem>>, %arg3: memref<1x32xf32, #tpu.memory_space<vmem>>, %arg4: memref<32x96xbf16, #tpu.memory_space<vmem>>, %arg5: memref<1x96xf32, #tpu.memory_space<vmem>>, %arg6: memref<16x96xbf16, #tpu.memory_space<vmem>>) attributes {dimension_semantics = [#tpu.dimension_semantics<parallel>], iteration_bounds = array<i64: 2>, scalar_prefetch = 0 : i64, scratch_operands = 0 : i64, tpu.core_type = #tpu.core_type<tc>, window_params = [{transform_indices = @transform_0, window_bounds = array<i64: 16, 32>}, {pipeline_mode = #tpu.pipeline_mode<synchronous>, transform_indices = @transform_1, window_bounds = array<i64: 1, 32>}, {pipeline_mode = #tpu.pipeline_mode<synchronous>, transform_indices = @transform_2, window_bounds = array<i64: 1, 32>}, {pipeline_mode = #tpu.pipeline_mode<synchronous>, transform_indices = @transform_3, window_bounds = array<i64: 32, 96>}, {pipeline_mode = #tpu.pipeline_mode<synchronous>, transform_indices = @transform_4, window_bounds = array<i64: 1, 96>}, {transform_indices = @transform_5, window_bounds = array<i64: 16, 96>}]} {
    %c0 = arith.constant 0 : index
    %c0_0 = arith.constant 0 : index
    %0 = vector.load %arg1[%c0, %c0_0] : memref<16x32xf32, #tpu.memory_space<vmem>>, vector<16x32xf32>
    %c0_1 = arith.constant 0 : index
    %c0_2 = arith.constant 0 : index
    %1 = vector.load %arg2[%c0_1, %c0_2] : memref<1x32xf32, #tpu.memory_space<vmem>>, vector<1x32xf32>
    %c0_3 = arith.constant 0 : index
    %c0_4 = arith.constant 0 : index
    %2 = vector.load %arg3[%c0_3, %c0_4] : memref<1x32xf32, #tpu.memory_space<vmem>>, vector<1x32xf32>
    %cst = arith.constant dense<0.000000e+00> : vector<16xf32>
    %3 = vector.multi_reduction <add>, %0, %cst [1] : vector<16x32xf32> to vector<16xf32>
    %4 = vector.shape_cast %3 : vector<16xf32> to vector<16x1xf32>
    %cst_5 = arith.constant 3.200000e+01 : f32
    %5 = vector.broadcast %cst_5 : f32 to vector<16x1xf32>
    %6 = arith.divf %4, %5 : vector<16x1xf32>
    %7 = vector.broadcast %6 : vector<16x1xf32> to vector<16x32xf32>
    %8 = arith.subf %0, %7 : vector<16x32xf32>
    %9 = arith.mulf %8, %8 : vector<16x32xf32>
    %cst_6 = arith.constant dense<0.000000e+00> : vector<16xf32>
    %10 = vector.multi_reduction <add>, %9, %cst_6 [1] : vector<16x32xf32> to vector<16xf32>
    %11 = vector.shape_cast %10 : vector<16xf32> to vector<16x1xf32>
    %cst_7 = arith.constant 3.200000e+01 : f32
    %12 = vector.broadcast %cst_7 : f32 to vector<16x1xf32>
    %13 = arith.divf %11, %12 : vector<16x1xf32>
    %cst_8 = arith.constant 9.99999974E-6 : f32
    %14 = vector.broadcast %cst_8 : f32 to vector<16x1xf32>
    %15 = arith.addf %13, %14 : vector<16x1xf32>
    %16 = math.rsqrt %15 : vector<16x1xf32>
    %17 = vector.broadcast %16 : vector<16x1xf32> to vector<16x32xf32>
    %18 = arith.mulf %8, %17 : vector<16x32xf32>
    %19 = vector.broadcast %1 : vector<1x32xf32> to vector<16x32xf32>
    %20 = arith.mulf %18, %19 : vector<16x32xf32>
    %21 = vector.broadcast %2 : vector<1x32xf32> to vector<16x32xf32>
    %22 = arith.addf %20, %21 : vector<16x32xf32>
    %23 = arith.truncf %22 : vector<16x32xf32> to vector<16x32xbf16>
    %c0_9 = arith.constant 0 : index
    %c0_10 = arith.constant 0 : index
    %24 = vector.load %arg4[%c0_9, %c0_10] : memref<32x96xbf16, #tpu.memory_space<vmem>>, vector<32x96xbf16>
    %cst_11 = arith.constant dense<0.000000e+00> : vector<16x96xf32>
    %25 = tpu.matmul %23, %24, %cst_11 {dimension_numbers = #tpu.dot_dimension_numbers<[1], [0], [0], [1], [0, 0, 1, 1], [], []>} : vector<16x32xbf16>, vector<32x96xbf16>, vector<16x96xf32> -> vector<16x96xf32>
    %c0_12 = arith.constant 0 : index
    %c0_13 = arith.constant 0 : index
    %26 = vector.load %arg5[%c0_12, %c0_13] : memref<1x96xf32, #tpu.memory_space<vmem>>, vector<1x96xf32>
    %27 = vector.broadcast %26 : vector<1x96xf32> to vector<16x96xf32>
    %28 = arith.addf %25, %27 : vector<16x96xf32>
    %29 = arith.truncf %28 : vector<16x96xf32> to vector<16x96xbf16>
    %c0_14 = arith.constant 0 : index
    %c0_15 = arith.constant 0 : index
    %30 = vector.load %arg6[%c0_14, %c0_15] : memref<16x96xbf16, #tpu.memory_space<vmem>>, vector<16x96xbf16>
    tpu.vector_store %arg6[%c0_14, %c0_15], %29 {strides = array<i32>} : memref<16x96xbf16, #tpu.memory_space<vmem>>, vector<16x96xbf16>,
    return
  }
  func.func @transform_0(%arg0: i32) -> (i32, i32) {
    %c0_i32 = arith.constant 0 : i32
    %c0_i32_0 = arith.constant 0 : i32
    return %arg0, %c0_i32 : i32, i32
  }
  func.func @transform_1(%arg0: i32) -> (i32, i32) {
    %c0_i32 = arith.constant 0 : i32
    %c0_i32_0 = arith.constant 0 : i32
    %c0_i32_1 = arith.constant 0 : i32
    return %c0_i32, %c0_i32_0 : i32, i32
  }
  func.func @transform_2(%arg0: i32) -> (i32, i32) {
    %c0_i32 = arith.constant 0 : i32
    %c0_i32_0 = arith.constant 0 : i32
    %c0_i32_1 = arith.constant 0 : i32
    return %c0_i32, %c0_i32_0 : i32, i32
  }
  func.func @transform_3(%arg0: i32) -> (i32, i32) {
    %c0_i32 = arith.constant 0 : i32
    %c0_i32_0 = arith.constant 0 : i32
    %c0_i32_1 = arith.constant 0 : i32
    return %c0_i32, %c0_i32_0 : i32, i32
  }
  func.func @transform_4(%arg0: i32) -> (i32, i32) {
    %c0_i32 = arith.constant 0 : i32
    %c0_i32_0 = arith.constant 0 : i32
    %c0_i32_1 = arith.constant 0 : i32
    return %c0_i32, %c0_i32_0 : i32, i32
  }
  func.func @transform_5(%arg0: i32) -> (i32, i32) {
    %c0_i32 = arith.constant 0 : i32
    %c0_i32_0 = arith.constant 0 : i32
    return %arg0, %c0_i32 : i32, i32
  }
}

</mosaic_0001>

<bundles_post_ra>
// kernel: tpu_custom_call.1
= control target key start
LH: loop header
LB: loop body
LE: loop exit
PB: predicated region body
PF: predicated region fallthrough
CT: control target
= control target key end

     0   :  { %7 = vsyncpa [#allocation3], 0  ;;  %s649_s0 = inlined_call_operand.hbm [shape: f32[16,128], index: 0, kind: input, shape index: {}]   ;;  %s650_s1 = inlined_call_operand.hbm [shape: f32[8,128], index: 1, kind: input, shape index: {}]   ;;  %s651_s2 = inlined_call_operand.hbm [shape: f32[16,128], index: 2, kind: output, shape index: {}]  }
   0x1   :  { %9 = vsyncpa [#allocation3 + $0x1], 0 }
   0x2   :  { %10 = vsyncpa [#allocation6], 0 }
   0x3   :  { %11 = vsyncpa [#allocation4], 0 }
   0x4   :  { %13 = vsyncpa [#allocation4 + $0x1], 0  ;;  %s483_s9 = smov 0   ;;  %s485_s10 = smov 0  }
   0x5   :  { %s487_s11 = smov 0   ;;  %s489_s12 = smov 0  }
   0x6 LB: > { %s504_s13 = sadd.s32 4294967295, %s463_s12   ;;  %s270_s14 = sadd.s32 4294967294, %s463_s12   ;;  %s463_s12 = sphi %s489_s12, %s674_s12   ;;  %s459_s11 = sphi %s487_s11, %s673_s11   ;;  %s455_s10 = sphi %s485_s10, %s672_s10   ;;  %s451_s9 = sphi %s483_s9, %s671_s9  }
   0x7   : > { %p39_p0 = scmp.ne.s32.totalorder %s455_s10, %s451_s9  ;;  %p652_p1 = scmp.eq.s32.totalorder %s504_s13, 0 }
   0x8   : > { %p90_p3 = scmp.eq.s32.totalorder %s270_s14, 1  ;;  %p271_p5 = scmp.ge.s32.totalorder %s463_s12, 1 }
   0x9   : > { %p513_p4 = por %p652_p1, %p39_p0  ;;  %p97_p7 = scmp.lt.s32.totalorder %s463_s12, 3 }
   0xa   : > { %p518_p6 = por %p90_p3, %p39_p0  ;;  %s465_s18 = smov [#allocation5]  }
   0xb   : > { %s656_s15 = scalar_select %p513_p4, 1, 0 }
   0xc   : > { %s657_s16 = scalar_select %p518_p6, 1, 0 }
   0xd   : > { %p523_p8 = pnand %p271_p5, %p97_p7  ;;  %s110_s19 = sshll.u32 %s465_s18, 4  ;;  %s111_s19 = int_to_ptr.vmem [resolvable:$true] %s110_s19 }
   0xe   : > { %s531_s20 = sadd.s32 1, %s463_s12   ;;  %s26_s24 = sadd.s32 1, %s459_s11 }
   0xf   : > { %s658_s17 = scalar_select %p523_p8, 1, 0 }
  0x10   : > { %p292_p10 = pneg %p523_p8  ;;  %s23_s22 = ssub.s32 %s463_s12, %s531_s20 }
  0x11   : > { %p541_p12 = scmp.eq.s32.totalorder %s23_s22, 0  ;;  %p33_p13 = scmp.ne.s32.totalorder %s459_s11, %s455_s10 }
  0x12   : > { %p535_p11 = pnand %p292_p10, %p652_p1  ;;  %s352_s25 = scalar_lea.vmem %s111_s19, 128 }
  0x13   : > { %p353_p3 = scmp.ne.s32.totalorder %s111_s19, %s352_s25  ;;  %p360_p9 = scmp.lt.s32.totalorder %s111_s19, %s111_s19 }
  0x14   : > { %p343_p0 = pneg %p535_p11  ;;  %p361_p2 = scmp.lt.s32.totalorder %s352_s25, %s352_s25 }
  0x16   : > { %p355_p5 = pnand %p353_p3, %p343_p0  ;;  %p362_p10 = por %p361_p2, %p360_p9 }
  0x18   : > { %p356_p7 = pneg %p355_p5 }
  0x1a   : > { %p363_p1 = pnand %p362_p10, %p356_p7 }
  0x1c   : > { %366 = shalt.err (!%p363_p1)
}
  0x1d   : > { %295 = dma.hbm_to_vmem [thread:$0]  (!%p535_p11), %s650_s1, 128, %s111_s19, [#allocation6]  }
  0x1e   : > { %s558_s28 = scalar_select %p541_p12, %s459_s11, %s26_s24  }
  0x1f   : > { %p34_p1 = scmp.eq.s32.totalorder %s463_s12, 0  ;;  %p661_p2 = scmp.eq.s32.totalorder %s504_s13, 1 }
  0x20   : > { %p305_p0 = scmp.lt.s32.totalorder %s463_s12, 2  ;;  %s121_s30 = sand.u32 1, %s459_s11  }
  0x21   : > { %p566_p9 = por %p661_p2, %p33_p13  ;;  %p35_p3 = por %p34_p1, %p33_p13 }
  0x22   : > { %s274_s3 = sshll.u32 %s121_s30, 3  ;;  %s275_s4 = sshll.u32 %s463_s12, 7 }
  0x23   : > { %s662_s29 = scalar_select %p566_p9, 1, 0 }
  0x24   : > { %s579_s7 = scalar_lea.hbm %s649_s0, %s275_s4  ;;  %s125_s8 = scalar_lea.vmem [#allocation2], %s274_s3 }
  0x25   : > { %s132_s14 = sshll.u32 %s125_s8, 4  ;;  %p581_p11 = pnand %p305_p0, %p35_p3  ;;  %s133_s14 = int_to_ptr.vmem [resolvable:$true] %s132_s14 }
  0x26   : > { %s122_s19 = scalar_lea.sflag [#allocation3], %s121_s30  ;;  %s367_s21 = scalar_lea.hbm %s579_s7, 128 }
  0x27   : > { %p368_p12 = scmp.ne.s32.totalorder %s579_s7, %s367_s21  ;;  %p369_p13 = pneg %p581_p11 }
  0x28   : > { %s372_s24 = scalar_lea.hbm %s649_s0, 256  ;;  %p373_p10 = scmp.lt.s32.totalorder %s579_s7, %s649_s0 }
  0x29   : > { %p370_p5 = pnand %p369_p13, %p368_p12  ;;  %p374_p1 = scmp.lt.s32.totalorder %s372_s24, %s367_s21 }
  0x2b   : > { %p371_p7 = pneg %p370_p5  ;;  %p375_p2 = por %p374_p1, %p373_p10 }
  0x2d   : > { %p376_p0 = pnand %p375_p2, %p371_p7 }
  0x2f   : > { %379 = shalt.err (!%p376_p0)
}
  0x30   : > { %s380_s27 = scalar_lea.vmem %s133_s14, 128  ;;  %s466_s30 = smov [#allocation2]  }
  0x31   : > { %p381_p3 = scmp.ne.s32.totalorder %s133_s14, %s380_s27  ;;  %s385_s3 = sshll.u32 %s466_s30, 4  ;;  %s386_s3 = int_to_ptr.vmem [resolvable:$false] %s385_s3 }
  0x32   : > { %s387_s4 = scalar_lea.vmem %s386_s3, 256  ;;  %p388_p12 = scmp.lt.s32.totalorder %s133_s14, %s386_s3 }
  0x33   : > { %p383_p6 = pnand %p381_p3, %p369_p13  ;;  %p389_p5 = scmp.lt.s32.totalorder %s387_s4, %s380_s27 }
  0x35   : > { %p384_p9 = pneg %p383_p6  ;;  %p390_p4 = por %p389_p5, %p388_p12 }
  0x37   : > { %p391_p8 = pnand %p390_p4, %p384_p9 }
  0x39   : > { %394 = shalt.err (!%p391_p8)
}
  0x3a   : > { %299 = dma.hbm_to_vmem [thread:$0]  (!%p581_p11), %s579_s7, 128, %s133_s14, %s122_s19  }
  0x3b   : > { %p664_p7 = scmp.ne.s32.totalorder %s658_s17, 0 }
  0x3c   : > { %s602_s5 = sand.u32 (!%p664_p7), 1, %s455_s10   ;;  %p665_p6 = scmp.ne.s32.totalorder (!%p664_p7), %s656_s15, 0 }
  0x3d   : > { %141 = sbr.rel (%p664_p7) target bundleno = 95 (0x5f), region = 28  ;;  %s277_s6 = sshll.u32 (!%p664_p7), %s602_s5, 3 }
  0x3e   : > { %s144_s8 = scalar_lea.sflag (!%p664_p7), [#allocation3], %s602_s5  ;;  %s147_s21 = scalar_lea.vmem (!%p664_p7), [#allocation2], %s277_s6 }
  0x42   : > { %438 = dma.done.wait (%p665_p6), %s144_s8, 128  }
  0x43   : > { %440 = vsyncadd (%p665_p6), %s144_s8, 4294967168  ;;  %p666_p4 = scmp.eq.s32.totalorder %s504_s13, 0 }
  0x45   : > { %442 = dma.done.wait (%p666_p4), [#allocation6], 128   ;;  %p667_p8 = pmov %p666_p4 }
  0x46   : > { %s171_s17 = scalar_lea.vmem [#allocation7], %s277_s6  ;;  %s281_s14 = sshll.u32 %s504_s13, 7  ;;  %v172_v0 = vld [vmem:[%s147_s21] sm:$0xff]  ;;  %v173_v1 = vld [vmem:[#allocation5] sm:$0xff] }
  0x47   : > { %444 = vsyncadd (%p667_p8), [#allocation6], 4294967168  ;;  %s190_s7 = sshll.u32 %s171_s17, 4  ;;  %v174_v2 = vadd.f32 %v173_v1, %v172_v0  ;;  %s188_s15 = scalar_lea.hbm %s651_s2, %s281_s14  ;;  %s191_s7 = int_to_ptr.vmem [resolvable:$true] %s190_s7 }
  0x48   : > { %s177_s22 = scalar_lea.sflag [#allocation4], %s602_s5  ;;  %s395_s23 = scalar_lea.vmem %s191_s7, 128 }
  0x49   : > { %175 = vst [vmem:[%s171_s17] sm:$0xff] %v174_v2  ;;  %p396_p9 = scmp.ne.s32.totalorder %s191_s7, %s395_s23  ;;  %p668_p11 = scmp.ne.s32.totalorder %s662_s29, 0 }
  0x4a   : > { %s467_s24 = smov [#allocation7]  }
  0x4b   : > { %p397_p13 = pnand %p396_p9, %p668_p11  ;;  %s399_s25 = sshll.u32 %s467_s24, 4  ;;  %s400_s25 = int_to_ptr.vmem [resolvable:$false] %s399_s25 }
  0x4c   : > { %s401_s26 = scalar_lea.vmem %s400_s25, 256  ;;  %p402_p1 = scmp.lt.s32.totalorder %s191_s7, %s400_s25 }
  0x4d   : > { %p398_p10 = pneg %p397_p13  ;;  %p403_p2 = scmp.lt.s32.totalorder %s401_s26, %s395_s23 }
  0x4f   : > { %p404_p0 = por %p403_p2, %p402_p1 }
  0x51   : > { %p405_p3 = pnand %p404_p0, %p398_p10 }
  0x53   : > { %408 = shalt.err (!%p405_p3)
}
  0x54   : > { %s409_s13 = scalar_lea.hbm %s188_s15, 128  ;;  %s413_s3 = scalar_lea.hbm %s651_s2, 256 }
  0x55   : > { %p410_p12 = scmp.ne.s32.totalorder %s188_s15, %s409_s13  ;;  %p414_p6 = scmp.lt.s32.totalorder %s188_s15, %s651_s2 }
  0x56   : > { %p415_p4 = scmp.lt.s32.totalorder %s413_s3, %s409_s13 }
  0x57   : > { %p411_p5 = pnand %p410_p12, %p668_p11 }
  0x58   : > { %p416_p8 = por %p415_p4, %p414_p6 }
  0x59   : > { %p412_p7 = pneg %p411_p5 }
  0x5b   : > { %p417_p9 = pnand %p416_p8, %p412_p7 }
  0x5d   : > { %420 = shalt.err (!%p417_p9)
}
  0x5e   : > { %290 = dma.vmem_to_hbm [thread:$0]  (%p668_p11), %s191_s7, 128, %s188_s15, %s177_s22  }
  0x5f PF: > { %s202_s6 = sand.u32 1, %s451_s9   ;;  %p669_p13 = scmp.ne.s32.totalorder %s657_s16, 0 }
  0x60   : > { %p670_p10 = scmp.ge.s32.totalorder %s463_s12, 2  ;;  %s203_s8 = scalar_lea.sflag [#allocation4], %s202_s6 }
  0x62   : > { %p301_p1 = pnand %p670_p10, %p669_p13 }
  0x64   : > { %p302_p2 = pneg %p301_p1 }
  0x66   : > { %446 = dma.done.wait (%p302_p2), %s203_s8, 128  }
  0x67   : > { %448 = vsyncadd (%p302_p2), %s203_s8, 4294967168  ;;  %p16_p0 = scmp.ge.s32.totalorder %s531_s20, 4   ;;  %s671_s9 = smov %s455_s10 }
  0x68   : > { %s672_s10 = smov %s459_s11  ;;  %s673_s11 = smov %s558_s28 }
  0x69   : > { %s674_s12 = smov %s531_s20  ;;  %18 = sbr.rel (!%p16_p0) target bundleno = 6 (0x6), region = 77 }
  0x6e   :  { %208 = vsyncpa [#allocation3], 1 }
  0x6f   :  { %210 = vsyncpa [#allocation3 + $0x1], 1 }
  0x70   :  { %211 = vsyncpa [#allocation6], 1 }
  0x71   :  { %212 = vsyncpa [#allocation4], 1 }
  0x72   :  { %214 = vsyncpa [#allocation4 + $0x1], 1 }

// kernel: tpu_custom_call.1
= control target key start
LH: loop header
LB: loop body
LE: loop exit
PB: predicated region body
PF: predicated region fallthrough
CT: control target
= control target key end

     0   :  { %10 = vsyncpa [#allocation3], 0  ;;  %s952_s0 = inlined_call_operand.hbm [shape: f32[32,32], index: 0, kind: input, shape index: {}]   ;;  %s953_s1 = inlined_call_operand.vmem [shape: f32[1,32], index: 1, kind: input, shape index: {}]   ;;  %s954_s2 = inlined_call_operand.vmem [shape: f32[1,32], index: 2, kind: input, shape index: {}]   ;;  %s955_s3 = inlined_call_operand.hbm [shape: bf16[32,96], index: 3, kind: input, shape index: {}]   ;;  %s956_s4 = inlined_call_operand.vmem [shape: f32[1,96], index: 4, kind: input, shape index: {}]   ;;  %s957_s5 = inlined_call_operand.hbm [shape: bf16[32,96], index: 5, kind: output, shape index: {}]  }
   0x1   :  { %12 = vsyncpa [#allocation3 + $0x1], 0 }
   0x2   :  { %13 = vsyncpa [#allocation6], 0 }
   0x3   :  { %14 = vsyncpa [#allocation4], 0 }
   0x4   :  { %16 = vsyncpa [#allocation4 + $0x1], 0  ;;  %s760_s18 = smov 0   ;;  %s762_s19 = smov 0  }
   0x5   :  { %s764_s20 = smov 0   ;;  %s766_s21 = smov 0  }
   0x6 LB: > { %s781_s22 = sadd.s32 4294967295, %s717_s21   ;;  %s485_s23 = sadd.s32 4294967294, %s717_s21   ;;  %s717_s21 = sphi %s766_s21, %s979_s21   ;;  %s713_s20 = sphi %s764_s20, %s978_s20   ;;  %s709_s19 = sphi %s762_s19, %s977_s19   ;;  %s705_s18 = sphi %s760_s18, %s976_s18  }
   0x7   : > { %p42_p0 = scmp.ne.s32.totalorder %s709_s19, %s705_s18  ;;  %p958_p1 = scmp.eq.s32.totalorder %s781_s22, 0 }
   0x8   : > { %p156_p3 = scmp.eq.s32.totalorder %s485_s23, 1  ;;  %p486_p5 = scmp.ge.s32.totalorder %s717_s21, 1 }
   0x9   : > { %p790_p4 = por %p958_p1, %p42_p0  ;;  %p163_p7 = scmp.lt.s32.totalorder %s717_s21, 3 }
   0xa   : > { %p795_p6 = por %p156_p3, %p42_p0  ;;  %s719_s27 = smov [#allocation5]  }
   0xb   : > { %s962_s24 = scalar_select %p790_p4, 1, 0 }
   0xc   : > { %s963_s25 = scalar_select %p795_p6, 1, 0 }
   0xd   : > { %p800_p8 = pnand %p486_p5, %p163_p7  ;;  %s181_s28 = sshll.u32 %s719_s27, 4  ;;  %s182_s28 = int_to_ptr.vmem [resolvable:$true] %s181_s28 }
   0xe   : > { %s814_s30 = sadd.s32 1, %s717_s21   ;;  %s29_s6 = sadd.s32 1, %s713_s20 }
   0xf   : > { %s964_s26 = scalar_select %p800_p8, 1, 0 }
  0x10   : > { %p532_p9 = pneg %p800_p8  ;;  %s26_s7 = ssub.s32 %s717_s21, %s814_s30 }
  0x11   : > { %s606_s8 = scalar_lea.vmem %s182_s28, 256  ;;  %p614_p5 = scmp.lt.s32.totalorder %s182_s28, %s182_s28 }
  0x12   : > { %p809_p11 = pnand %p532_p9, %p958_p1  ;;  %p607_p13 = scmp.ne.s32.totalorder %s182_s28, %s606_s8 }
  0x13   : > { %p615_p7 = scmp.lt.s32.totalorder %s606_s8, %s606_s8 }
  0x14   : > { %p597_p12 = pneg %p809_p11 }
  0x15   : > { %p616_p10 = por %p615_p7, %p614_p5 }
  0x16   : > { %p609_p0 = pnand %p607_p13, %p597_p12 }
  0x18   : > { %p610_p3 = pneg %p609_p0 }
  0x1a   : > { %p617_p2 = pnand %p616_p10, %p610_p3 }
  0x1c   : > { %620 = shalt.err (!%p617_p2)
}
  0x1d   : > { %s720_s9 = smov 64   ;;  %s721_s10 = smov 4  }
  0x1e   : > { %535 = dma.hbm_to_vmem [thread:$0]  (!%p809_p11), %s955_s3, 256, %s182_s28, [#allocation6], %s720_s9, %s720_s9, %s721_s10  }
  0x1f   : > { %p27_p9 = scmp.eq.s32.totalorder %s26_s7, 0  ;;  %p36_p12 = scmp.ne.s32.totalorder %s713_s20, %s709_s19 }
  0x20   : > { %p37_p10 = scmp.eq.s32.totalorder %s717_s21, 0  ;;  %p545_p2 = scmp.lt.s32.totalorder %s717_s21, 2 }
  0x21   : > { %s831_s13 = scalar_select %p27_p9, %s713_s20, %s29_s6  }
  0x22   : > { %p38_p13 = por %p37_p10, %p36_p12  ;;  %p966_p0 = scmp.eq.s32.totalorder %s781_s22, 1 }
  0x23   : > { %s198_s15 = sand.u32 1, %s713_s20   ;;  %s509_s16 = sshll.u32 %s717_s21, 8 }
  0x24   : > { %p835_p3 = por %p966_p0, %p36_p12  ;;  %s489_s17 = sshll.u32 %s198_s15, 4 }
  0x25   : > { %s844_s29 = scalar_lea.hbm %s952_s0, %s509_s16  ;;  %s202_s28 = scalar_lea.vmem [#allocation2], %s489_s17 }
  0x26   : > { %s967_s14 = scalar_select %p835_p3, 1, 0 }
  0x27   : > { %s209_s6 = sshll.u32 %s202_s28, 4  ;;  %p846_p11 = pnand %p545_p2, %p38_p13  ;;  %s850_s6 = int_to_ptr.vmem [resolvable:$true] %s209_s6 }
  0x28   : > { %s852_s8 = scalar_lea.sflag [#allocation3], %s198_s15  ;;  %s621_s9 = scalar_lea.hbm %s844_s29, 256 }
  0x29   : > { %p622_p5 = scmp.ne.s32.totalorder %s844_s29, %s621_s9  ;;  %p623_p7 = pneg %p846_p11 }
  0x2a   : > { %s626_s12 = scalar_lea.hbm %s952_s0, 512  ;;  %p627_p10 = scmp.lt.s32.totalorder %s844_s29, %s952_s0 }
  0x2b   : > { %p624_p9 = pnand %p623_p7, %p622_p5  ;;  %p628_p2 = scmp.lt.s32.totalorder %s626_s12, %s621_s9 }
  0x2d   : > { %p625_p12 = pneg %p624_p9  ;;  %p629_p13 = por %p628_p2, %p627_p10 }
  0x2f   : > { %p630_p0 = pnand %p629_p13, %p625_p12 }
  0x31   : > { %633 = shalt.err (!%p630_p0)
}
  0x32   : > { %s634_s15 = scalar_lea.vmem %s850_s6, 256  ;;  %s722_s23 = smov [#allocation2]  }
  0x33   : > { %p635_p1 = scmp.ne.s32.totalorder %s850_s6, %s634_s15  ;;  %s639_s27 = sshll.u32 %s722_s23, 4  ;;  %s640_s27 = int_to_ptr.vmem [resolvable:$false] %s639_s27 }
  0x34   : > { %s641_s28 = scalar_lea.vmem %s640_s27, 512  ;;  %p642_p9 = scmp.lt.s32.totalorder %s850_s6, %s640_s27 }
  0x35   : > { %p637_p6 = pnand %p635_p1, %p623_p7  ;;  %p643_p3 = scmp.lt.s32.totalorder %s641_s28, %s634_s15 }
  0x37   : > { %p638_p5 = pneg %p637_p6  ;;  %p644_p4 = por %p643_p3, %p642_p9 }
  0x39   : > { %p645_p8 = pnand %p644_p4, %p638_p5 }
  0x3b   : > { %648 = shalt.err (!%p645_p8)
}
  0x3c   : > { %s723_s9 = smov 128   ;;  %s724_s10 = smov 8  }
  0x3d   : > { %539 = dma.hbm_to_vmem [thread:$0]  (!%p846_p11), %s844_s29, 256, %s850_s6, %s852_s8, %s723_s9, %s723_s9, %s724_s10  }
  0x3e   : > { %p969_p1 = scmp.ne.s32.totalorder %s964_s26, 0 }
  0x3f   : > { %s876_s11 = sand.u32 (!%p969_p1), 1, %s709_s19   ;;  %p970_p4 = scmp.ne.s32.totalorder (!%p969_p1), %s962_s24, 0 }
  0x40   : > { %221 = sbr.rel (%p969_p1) target bundleno = 603 (0x25b), region = 40  ;;  %s493_s12 = sshll.u32 (!%p969_p1), %s876_s11, 4 }
  0x41   : > { %s224_s16 = scalar_lea.sflag (!%p969_p1), [#allocation3], %s876_s11  ;;  %s227_s17 = scalar_lea.vmem (!%p969_p1), [#allocation2], %s493_s12 }
  0x45   : > { %692 = dma.done.wait (%p970_p4), %s224_s16, 256  }
  0x46   : > { %694 = vsyncadd (%p970_p4), %s224_s16, 4294967040  ;;  %p971_p6 = scmp.eq.s32.totalorder %s781_s22, 0 }
  0x48   : > { %696 = dma.done.wait (%p971_p6), [#allocation6], 256   ;;  %p972_p8 = pmov %p971_p6 }
  0x49   : > { %vm265_vm0 = vcmask 261120   ;;  %v261_v0 = vld [vmem:[%s227_s17] sm:$0xff]  ;;  %v262_v1 = vld [vmem:[%s227_s17 + $0x8] sm:$0xff]  ;;  %v725_v15 = vmov 0.0   ;;  %vm726_vm1 = vmmov 0   ;;  %s495_s15 = sshll.u32 %s876_s11, 3 }
  0x4a   : > { %698 = vsyncadd (%p972_p8), [#allocation6], 4294967040  ;;  %v266_v2 = vsel %vm265_vm0, %v261_v0, 0.0  ;;  %v269_v3 = vsel %vm265_vm0, %v262_v1, 0.0  ;;  %v589_v14 = vld [vmem:[#allocation5 + $0x8] sm:$0xff]   ;;  %516 = vmatprep.subr.bf16.mxu0 %v725_v15  ;;  %520 = vmatprep.mubr.msk.bf16.mxu0 %vm726_vm1, %v725_v15  ;;  %v590_v16 = vld [vmem:[#allocation5] sm:$0xff]  }
  0x4b   : > { %267 = vadd.xlane.f32.xlu0 %v266_v2  ;;  %517 = vmatpush3.bf16.msra.mxu0 %v589_v14  ;;  %v496_v25 = vld [vmem:[%s953_s1] ss:$0 sm:$0xff]  ;;  %vm385_vm2 = vcmask 781312   ;;  %s257_s23 = scalar_lea.vmem [#allocation7], %s495_s15  ;;  %s512_s28 = sshll.u32 %s781_s22, 7 }
  0x4c   : > { %518 = vmatprep.subr.bf16.mxu0 %v725_v15  ;;  %v497_v29 = vld [vmem:[%s954_s2] ss:$0 sm:$0xff]  ;;  %s402_s27 = sshll.u32 %s257_s23, 4  ;;  %s907_s12 = scalar_lea.hbm %s957_s5, %s512_s28  ;;  %s909_s27 = int_to_ptr.vmem [resolvable:$true] %s402_s27 }
  0x4d   : > { %v498_v34 = vld [vmem:[%s956_s4] ss:$0 sm:$0xff]  ;;  %s389_s16 = scalar_lea.sflag [#allocation4], %s876_s11  ;;  %s649_s17 = scalar_lea.vmem %s909_s27, 128 }
  0x4e   : > { %p650_p3 = scmp.ne.s32.totalorder %s909_s27, %s649_s17  ;;  %p973_p11 = scmp.ne.s32.totalorder %s967_s14, 0 }
  0x4f   : > { %270 = vadd.xlane.f32.xlu0 %v269_v3  ;;  %519 = vmatpush3.bf16.msra.mxu0 %v590_v16  ;;  %s727_s22 = smov [#allocation7]  }
  0x50   : > { %p651_p7 = pnand %p650_p3, %p973_p11  ;;  %s653_s24 = sshll.u32 %s727_s22, 4  ;;  %s654_s24 = int_to_ptr.vmem [resolvable:$false] %s653_s24 }
  0x51   : > { %s655_s26 = scalar_lea.vmem %s654_s24, 256  ;;  %p656_p10 = scmp.lt.s32.totalorder %s909_s27, %s654_s24 }
  0x52   : > { %p652_p12 = pneg %p651_p7  ;;  %p657_p2 = scmp.lt.s32.totalorder %s655_s26, %s649_s17 }
  0x54   : > { %p658_p13 = por %p657_p2, %p656_p10 }
  0x56   : > { %p659_p0 = pnand %p658_p13, %p652_p12 }
  0xd4   : > { %v268_v4 = vpop.xlane.xlu0 %267 }
  0xd5   : > { %v273_v5 = vmul.f32 0.03125, %v268_v4 }
  0xd7   : > { %v275_v6 = vsub.f32 %v261_v0, %v273_v5 }
  0xd8   : > { %v271_v7 = vpop.xlane.xlu0 %270 }
  0xd9   : > { %v274_v8 = vmul.f32 0.03125, %v271_v7  ;;  %v277_v9 = vmul.f32 %v275_v6, %v275_v6 }
  0xdb   : > { %v276_v10 = vsub.f32 %v262_v1, %v274_v8  ;;  %v279_v11 = vsel %vm265_vm0, %v277_v9, 0.0 }
  0xdc   : > { %280 = vadd.xlane.f32.xlu1 %v279_v11 }
  0xdd   : > { %v278_v12 = vmul.f32 %v276_v10, %v276_v10 }
  0xdf   : > { %v282_v13 = vsel %vm265_vm0, %v278_v12, 0.0 }
  0xe0   : > { %283 = vadd.xlane.f32.xlu1 %v282_v13 }
 0x165   : > { %v281_v17 = vpop.xlane.xlu1 %280 }
 0x166   : > { %v285_v18 = vmul.f32 0.03125, %v281_v17 }
 0x168   : > { %v287_v19 = vadd.f32 1e-05, %v285_v18 }
 0x169   : > { %v284_v20 = vpop.xlane.xlu1 %283 }
 0x16a   : > { %591 = vrsqrt.f32 %v287_v19  ;;  %v286_v21 = vmul.f32 0.03125, %v284_v20 }
 0x16c   : > { %v288_v22 = vadd.f32 1e-05, %v286_v21 }
 0x16e   : > { %593 = vrsqrt.f32 %v288_v22 }
 0x177   : > { %v592_v23 = vpop.eup %591 }
 0x178   : > { %v291_v24 = vmul.f32 %v592_v23, %v275_v6 }
 0x17a   : > { %v299_v28 = vmul.f32 %v496_v25, %v291_v24 }
 0x17b   : > { %v594_v26 = vpop.eup %593 }
 0x17c   : > { %v292_v27 = vmul.f32 %v594_v26, %v276_v10  ;;  %v307_v31 = vadd.f32 %v497_v29, %v299_v28 }
 0x17e   : > { %v300_v30 = vmul.f32 %v496_v25, %v292_v27 }
 0x180   : > { %v308_v32 = vadd.f32 %v497_v29, %v300_v30 }
 0x182   : > { %v309_v33 = vpack.c.bf16 %v308_v32, %v307_v31 }
 0x184   : > { %521 = vmatmul.mubr.msk.bf16.vlgmr.msra.gmra.mxu0 %vm265_vm0, %v309_v33 }
 0x244   : > { %v370_v35 = vpop.f32.mrf.mxu0 }
 0x245   : > { %v371_v36 = vadd.f32 %v498_v34, %v370_v35 }
 0x246   : > { %v522_v37 = vpop.f32.mrf.mxu0 }
 0x247   : > { %v510_v38 = vpack.c.bf16 %v371_v36, %v371_v36 }
 0x248   : > { %v373_v39 = vpop.f32.mrf.mxu0 }
 0x249   : > { %386 = vst.msk [vmem:[%s257_s23] sm:$0xf] %vm385_vm2, %v510_v38  ;;  %v374_v40 = vadd.f32 %v498_v34, %v373_v39 }
 0x24a   : > { %v523_v41 = vpop.f32.mrf.mxu0 }
 0x24b   : > { %v511_v42 = vpack.c.bf16 %v374_v40, %v374_v40 }
 0x24d   : > { %387 = vst.msk [vmem:[%s257_s23 + $0x4] sm:$0xf] %vm385_vm2, %v511_v42 }
 0x24e   : > { %662 = shalt.err (!%p659_p0)
}
 0x24f   : > { %s663_s29 = scalar_lea.hbm %s907_s12, 128  ;;  %s667_s8 = scalar_lea.hbm %s957_s5, 256 }
 0x250   : > { %p664_p5 = scmp.ne.s32.totalorder %s907_s12, %s663_s29  ;;  %p668_p4 = scmp.lt.s32.totalorder %s907_s12, %s957_s5 }
 0x251   : > { %p669_p6 = scmp.lt.s32.totalorder %s667_s8, %s663_s29 }
 0x252   : > { %p665_p9 = pnand %p664_p5, %p973_p11 }
 0x253   : > { %p670_p8 = por %p669_p6, %p668_p4 }
 0x254   : > { %p666_p1 = pneg %p665_p9 }
 0x256   : > { %p671_p3 = pnand %p670_p8, %p666_p1 }
 0x258   : > { %674 = shalt.err (!%p671_p3)
}
 0x259   : > { %s728_s28 = smov 64   ;;  %s729_s9 = smov 4  }
 0x25a   : > { %530 = dma.vmem_to_hbm [thread:$0]  (%p973_p11), %s909_s27, 128, %s907_s12, %s389_s16, %s728_s28, %s728_s28, %s729_s9  }
 0x25b PF: > { %s417_s10 = sand.u32 1, %s705_s18   ;;  %p974_p7 = scmp.ne.s32.totalorder %s963_s25, 0 }
 0x25c   : > { %p975_p12 = scmp.ge.s32.totalorder %s717_s21, 2  ;;  %s418_s17 = scalar_lea.sflag [#allocation4], %s417_s10 }
 0x25e   : > { %p541_p10 = pnand %p975_p12, %p974_p7 }
 0x260   : > { %p542_p2 = pneg %p541_p10 }
 0x262   : > { %700 = dma.done.wait (%p542_p2), %s418_s17, 128  }
 0x263   : > { %702 = vsyncadd (%p542_p2), %s418_s17, 4294967168  ;;  %p19_p13 = scmp.ge.s32.totalorder %s814_s30, 4   ;;  %s976_s18 = smov %s709_s19 }
 0x264   : > { %s977_s19 = smov %s713_s20  ;;  %s978_s20 = smov %s831_s13 }
 0x265   : > { %s979_s21 = smov %s814_s30  ;;  %21 = sbr.rel (!%p19_p13) target bundleno = 6 (0x6), region = 89 }
 0x26a   :  { %423 = vsyncpa [#allocation3], 1 }
 0x26b   :  { %425 = vsyncpa [#allocation3 + $0x1], 1 }
 0x26c   :  { %426 = vsyncpa [#allocation6], 1 }
 0x26d   :  { %427 = vsyncpa [#allocation4], 1 }
 0x26e   :  { %429 = vsyncpa [#allocation4 + $0x1], 1 }

</bundles_post_ra>
